<compile_context>
chip_gen: v7x
topology: tpu7x:2x2x1
jax: 0.10.0
libtpu: 0.0.40
codegen_flags: <defaults>
</compile_context>

<pallas_src>
import jax
import jax.numpy as jnp
from jax.experimental import pallas as pl
from jax.experimental.pallas import tpu as pltpu


def _round_up(x, m):
    return (x + m - 1) // m * m


# ----------------------------------------------------------------------------
# Pallas kernel: one (TM, K) x (K, N) tile of  relu(patches @ W_folded + bias)
# ----------------------------------------------------------------------------
def _matmul_bias_relu_kernel(x_ref, w_ref, b_ref, o_ref):
    # x_ref: (TM, K) bf16 patches   w_ref: (K, N) bf16 (BN scale pre-folded)
    # b_ref: (1, N)  f32 folded BN bias
    acc = jnp.dot(x_ref[...], w_ref[...], preferred_element_type=jnp.float32)
    y = jnp.maximum(acc + b_ref[...], 0.0)
    o_ref[...] = y.astype(o_ref.dtype)


def fused_matmul_bias_relu(patches, w_mat, bias, *, out_dtype, tm_target=512):
    """relu(patches @ w_mat + bias), tiled & pipelined over rows of `patches`."""
    M, K = patches.shape
    N = w_mat.shape[1]
    tm = min(tm_target, M)
    assert M % tm == 0 and tm % 16 == 0, (M, tm)
    grid = (M // tm,)
    return pl.pallas_call(
        _matmul_bias_relu_kernel,
        out_shape=jax.ShapeDtypeStruct((M, N), out_dtype),
        grid=grid,
        in_specs=[
            pl.BlockSpec((tm, K), lambda i: (i, 0)),   # streamed, double-buffered
            pl.BlockSpec((K, N), lambda i: (0, 0)),    # resident (constant block)
            pl.BlockSpec((1, N), lambda i: (0, 0)),    # resident
        ],
        out_specs=pl.BlockSpec((tm, N), lambda i: (i, 0)),
        compiler_params=pltpu.CompilerParams(
            # M tiles are independent -> shard across both TCs on v7x.
            dimension_semantics=("parallel",),
            # Per-step working set (TM=512, K=576, N=96, double-buffered) is
            # < 2 MiB, safely inside v7x's 64 MiB physical VMEM; the explicit
            # limit mainly lifts v5e's 16 MiB scoped default.
            vmem_limit_bytes=32 * 1024 * 1024,
        ),
    )(patches, w_mat, bias)


# ----------------------------------------------------------------------------
# Glue: im2col for a 3x3 / stride-2 / pad-1 conv (NHWC)
# ----------------------------------------------------------------------------
def im2col_3x3_s2_p1(x_nhwc):
    B, H, W, C = x_nhwc.shape
    k, s, p = 3, 2, 1
    Ho = (H + 2 * p - k) // s + 1
    Wo = (W + 2 * p - k) // s + 1
    xp = jnp.pad(x_nhwc, ((0, 0), (p, p), (p, p), (0, 0)))
    taps = []
    for kh in range(k):
        for kw in range(k):
            taps.append(xp[:, kh:kh + s * Ho:s, kw:kw + s * Wo:s, :])
    # (B, Ho, Wo, 9, C) -> flat K index = (kh*3+kw)*C + c  (matches weight reshape)
    patches = jnp.stack(taps, axis=-2).reshape(B * Ho * Wo, k * k * C)
    return patches, (B, Ho, Wo)


def conv_bn_relu(x_nhwc, w_oihw, conv_bias, gamma, beta, mean, var,
                 *, eps=1e-4, out_dtype=jnp.bfloat16, tm_target=512):
    """One Conv2d(3x3,s2,p1) + BatchNorm2d(eval, eps) + ReLU stage."""
    Cout, Cin, kh, kw = w_oihw.shape
    patches, (B, Ho, Wo) = im2col_3x3_s2_p1(x_nhwc.astype(jnp.bfloat16))
    M, K = patches.shape

    # Fold inference-mode BN into the GEMM: scale -> weights, shift -> bias.
    bn_scale = gamma / jnp.sqrt(var + eps)                          # (Cout,)
    w_mat = jnp.transpose(w_oihw, (2, 3, 1, 0)).reshape(K, Cout)    # im2col order
    w_mat = (w_mat * bn_scale[None, :]).astype(jnp.bfloat16)
    bias = ((conv_bias - mean) * bn_scale + beta).reshape(1, Cout)
    bias = bias.astype(jnp.float32)

    # Layout-friendly padding: K -> multiple of 16 (27 -> 32 for stage 1),
    # M -> multiple of the row tile.
    K_pad = _round_up(K, 16)
    M_pad = _round_up(M, 16)
    tm = min(tm_target, M_pad)
    M_pad = _round_up(M_pad, tm)
    if K_pad != K:
        patches = jnp.pad(patches, ((0, 0), (0, K_pad - K)))
        w_mat = jnp.pad(w_mat, ((0, K_pad - K), (0, 0)))
    if M_pad != M:
        patches = jnp.pad(patches, ((0, M_pad - M), (0, 0)))

    out = fused_matmul_bias_relu(patches, w_mat, bias,
                                 out_dtype=out_dtype, tm_target=tm)
    return out[:M].reshape(B, Ho, Wo, Cout)


# ----------------------------------------------------------------------------
# PatchEmbed parameters + forward
# ----------------------------------------------------------------------------
def init_patch_embed_params(key, in_channels=3, in_dim=64, dim=96):
    ks = jax.random.split(key, 7)
    p = {}
    p["w1"] = jax.random.normal(ks[0], (in_dim, in_channels, 3, 3), jnp.float32) * 0.1
    p["b1"] = jax.random.normal(ks[1], (in_dim,), jnp.float32) * 0.1
    p["g1"] = 1.0 + 0.1 * jax.random.normal(ks[2], (in_dim,), jnp.float32)
    p["be1"] = 0.1 * jax.random.normal(ks[3], (in_dim,), jnp.float32)
    p["m1"] = 0.1 * jax.random.normal(ks[4], (in_dim,), jnp.float32)
    p["v1"] = jnp.abs(jax.random.normal(ks[5], (in_dim,), jnp.float32)) + 0.5

    ks2 = jax.random.split(ks[6], 6)
    p["w2"] = jax.random.normal(ks2[0], (dim, in_dim, 3, 3), jnp.float32) * 0.05
    p["b2"] = jax.random.normal(ks2[1], (dim,), jnp.float32) * 0.1
    p["g2"] = 1.0 + 0.1 * jax.random.normal(ks2[2], (dim,), jnp.float32)
    p["be2"] = 0.1 * jax.random.normal(ks2[3], (dim,), jnp.float32)
    p["m2"] = 0.1 * jax.random.normal(ks2[4], (dim,), jnp.float32)
    p["v2"] = jnp.abs(jax.random.normal(ks2[5], (dim,), jnp.float32)) + 0.5
    return p


@jax.jit
def patch_embed_forward(x_nchw, params):
    """x: (B, C, H, W)  ->  (B, dim, H/4, W/4)   (matches PyTorch PatchEmbed)."""
    x = jnp.transpose(x_nchw, (0, 2, 3, 1))                 # NCHW -> NHWC (C=3, cheap)
    # Stage 1: bf16 NHWC activations feed stage-2 im2col directly (no transpose,
    # half the inter-stage HBM bytes).
    x = conv_bn_relu(x, params["w1"], params["b1"], params["g1"], params["be1"],
                     params["m1"], params["v1"], out_dtype=jnp.bfloat16)
    # Stage 2: final output in f32.
    x = conv_bn_relu(x, params["w2"], params["b2"], params["g2"], params["be2"],
                     params["m2"], params["v2"], out_dtype=jnp.float32)
    return jnp.transpose(x, (0, 3, 1, 2))                   # NHWC -> NCHW


# ----------------------------------------------------------------------------
# Pure-JAX f32 reference (lax conv) for correctness check
# ----------------------------------------------------------------------------
def _ref_stage(x_nchw, w, b, g, be, m, v, eps=1e-4):
    y = jax.lax.conv_general_dilated(
        x_nchw, w, window_strides=(2, 2), padding=((1, 1), (1, 1)),
        dimension_numbers=("NCHW", "OIHW", "NCHW"))
    y = y + b[None, :, None, None]
    y = (y - m[None, :, None, None]) / jnp.sqrt(v[None, :, None, None] + eps)
    y = y * g[None, :, None, None] + be[None, :, None, None]
    return jnp.maximum(y, 0.0)


def patch_embed_reference(x_nchw, p):
    x = _ref_stage(x_nchw, p["w1"], p["b1"], p["g1"], p["be1"], p["m1"], p["v1"])
    x = _ref_stage(x, p["w2"], p["b2"], p["g2"], p["be2"], p["m2"], p["v2"])
    return x


if __name__ == "__main__":
    key = jax.random.PRNGKey(0)
    kx, kp = jax.random.split(key)

    B, C, H, W = 2, 3, 16, 16
    in_dim, dim = 64, 96
    x = jax.random.normal(kx, (B, C, H, W), jnp.float32)
    params = init_patch_embed_params(kp, in_channels=C, in_dim=in_dim, dim=dim)

    out = patch_embed_forward(x, params)
    out = jax.block_until_ready(out)
    assert out.shape == (B, dim, H // 4, W // 4), out.shape

    ref = jax.block_until_ready(patch_embed_reference(x, params))
    # bf16 GEMM operands + bf16 inter-stage activations -> loosened tolerance
    # vs. the f32 reference (accumulation stays f32 on the MXU).
    max_diff = float(jnp.max(jnp.abs(out - ref)))
    assert jnp.allclose(out, ref, atol=5e-2, rtol=5e-2), max_diff

    print("KERNEL_OK")
</pallas_src>

<mosaic_0001>
module attributes {stable_mosaic.version = 11 : i64} {
  func.func @_matmul_bias_relu_kernel(%arg0: i32, %arg1: memref<128x32xbf16, #tpu.memory_space<vmem>>, %arg2: memref<32x64xbf16, #tpu.memory_space<vmem>>, %arg3: memref<1x64xf32, #tpu.memory_space<vmem>>, %arg4: memref<128x64xbf16, #tpu.memory_space<vmem>>) attributes {dimension_semantics = [#tpu.dimension_semantics<parallel>], iteration_bounds = array<i64: 1>, scalar_prefetch = 0 : i64, scratch_operands = 0 : i64, tpu.core_type = #tpu.core_type<tc>, window_params = [{transform_indices = @transform_0, window_bounds = array<i64: 128, 32>}, {pipeline_mode = #tpu.pipeline_mode<synchronous>, transform_indices = @transform_1, window_bounds = array<i64: 32, 64>}, {pipeline_mode = #tpu.pipeline_mode<synchronous>, transform_indices = @transform_2, window_bounds = array<i64: 1, 64>}, {transform_indices = @transform_3, window_bounds = array<i64: 128, 64>}]} {
    %c0 = arith.constant 0 : index
    %c0_0 = arith.constant 0 : index
    %0 = vector.load %arg1[%c0, %c0_0] : memref<128x32xbf16, #tpu.memory_space<vmem>>, vector<128x32xbf16>
    %c0_1 = arith.constant 0 : index
    %c0_2 = arith.constant 0 : index
    %1 = vector.load %arg2[%c0_1, %c0_2] : memref<32x64xbf16, #tpu.memory_space<vmem>>, vector<32x64xbf16>
    %cst = arith.constant dense<0.000000e+00> : vector<128x64xf32>
    %2 = tpu.matmul %0, %1, %cst {dimension_numbers = #tpu.dot_dimension_numbers<[1], [0], [0], [1], [0, 0, 1, 1], [], []>} : vector<128x32xbf16>, vector<32x64xbf16>, vector<128x64xf32> -> vector<128x64xf32>
    %c0_3 = arith.constant 0 : index
    %c0_4 = arith.constant 0 : index
    %3 = vector.load %arg3[%c0_3, %c0_4] : memref<1x64xf32, #tpu.memory_space<vmem>>, vector<1x64xf32>
    %4 = vector.broadcast %3 : vector<1x64xf32> to vector<128x64xf32>
    %5 = arith.addf %2, %4 : vector<128x64xf32>
    %cst_5 = arith.constant 0.000000e+00 : f32
    %6 = vector.broadcast %cst_5 : f32 to vector<128x64xf32>
    %7 = arith.maximumf %5, %6 : vector<128x64xf32>
    %8 = arith.truncf %7 : vector<128x64xf32> to vector<128x64xbf16>
    %c0_6 = arith.constant 0 : index
    %c0_7 = arith.constant 0 : index
    %9 = vector.load %arg4[%c0_6, %c0_7] : memref<128x64xbf16, #tpu.memory_space<vmem>>, vector<128x64xbf16>
    tpu.vector_store %arg4[%c0_6, %c0_7], %8 {strides = array<i32>} : memref<128x64xbf16, #tpu.memory_space<vmem>>, vector<128x64xbf16>,
    return
  }
  func.func @transform_0(%arg0: i32) -> (i32, i32) {
    %c0_i32 = arith.constant 0 : i32
    %c0_i32_0 = arith.constant 0 : i32
    return %arg0, %c0_i32 : i32, i32
  }
  func.func @transform_1(%arg0: i32) -> (i32, i32) {
    %c0_i32 = arith.constant 0 : i32
    %c0_i32_0 = arith.constant 0 : i32
    %c0_i32_1 = arith.constant 0 : i32
    return %c0_i32, %c0_i32_0 : i32, i32
  }
  func.func @transform_2(%arg0: i32) -> (i32, i32) {
    %c0_i32 = arith.constant 0 : i32
    %c0_i32_0 = arith.constant 0 : i32
    %c0_i32_1 = arith.constant 0 : i32
    return %c0_i32, %c0_i32_0 : i32, i32
  }
  func.func @transform_3(%arg0: i32) -> (i32, i32) {
    %c0_i32 = arith.constant 0 : i32
    %c0_i32_0 = arith.constant 0 : i32
    return %arg0, %c0_i32 : i32, i32
  }
}

module attributes {stable_mosaic.version = 11 : i64} {
  func.func @_matmul_bias_relu_kernel(%arg0: i32, %arg1: memref<32x576xbf16, #tpu.memory_space<vmem>>, %arg2: memref<576x96xbf16, #tpu.memory_space<vmem>>, %arg3: memref<1x96xf32, #tpu.memory_space<vmem>>, %arg4: memref<32x96xf32, #tpu.memory_space<vmem>>) attributes {dimension_semantics = [#tpu.dimension_semantics<parallel>], iteration_bounds = array<i64: 1>, scalar_prefetch = 0 : i64, scratch_operands = 0 : i64, tpu.core_type = #tpu.core_type<tc>, window_params = [{transform_indices = @transform_0, window_bounds = array<i64: 32, 576>}, {pipeline_mode = #tpu.pipeline_mode<synchronous>, transform_indices = @transform_1, window_bounds = array<i64: 576, 96>}, {pipeline_mode = #tpu.pipeline_mode<synchronous>, transform_indices = @transform_2, window_bounds = array<i64: 1, 96>}, {transform_indices = @transform_3, window_bounds = array<i64: 32, 96>}]} {
    %c0 = arith.constant 0 : index
    %c0_0 = arith.constant 0 : index
    %0 = vector.load %arg1[%c0, %c0_0] : memref<32x576xbf16, #tpu.memory_space<vmem>>, vector<32x576xbf16>
    %c0_1 = arith.constant 0 : index
    %c0_2 = arith.constant 0 : index
    %1 = vector.load %arg2[%c0_1, %c0_2] : memref<576x96xbf16, #tpu.memory_space<vmem>>, vector<576x96xbf16>
    %cst = arith.constant dense<0.000000e+00> : vector<32x96xf32>
    %2 = tpu.matmul %0, %1, %cst {dimension_numbers = #tpu.dot_dimension_numbers<[1], [0], [0], [1], [0, 0, 1, 1], [], []>} : vector<32x576xbf16>, vector<576x96xbf16>, vector<32x96xf32> -> vector<32x96xf32>
    %c0_3 = arith.constant 0 : index
    %c0_4 = arith.constant 0 : index
    %3 = vector.load %arg3[%c0_3, %c0_4] : memref<1x96xf32, #tpu.memory_space<vmem>>, vector<1x96xf32>
    %4 = vector.broadcast %3 : vector<1x96xf32> to vector<32x96xf32>
    %5 = arith.addf %2, %4 : vector<32x96xf32>
    %cst_5 = arith.constant 0.000000e+00 : f32
    %6 = vector.broadcast %cst_5 : f32 to vector<32x96xf32>
    %7 = arith.maximumf %5, %6 : vector<32x96xf32>
    %c0_6 = arith.constant 0 : index
    %c0_7 = arith.constant 0 : index
    %8 = vector.load %arg4[%c0_6, %c0_7] : memref<32x96xf32, #tpu.memory_space<vmem>>, vector<32x96xf32>
    tpu.vector_store %arg4[%c0_6, %c0_7], %7 {strides = array<i32>} : memref<32x96xf32, #tpu.memory_space<vmem>>, vector<32x96xf32>,
    return
  }
  func.func @transform_0(%arg0: i32) -> (i32, i32) {
    %c0_i32 = arith.constant 0 : i32
    %c0_i32_0 = arith.constant 0 : i32
    return %arg0, %c0_i32 : i32, i32
  }
  func.func @transform_1(%arg0: i32) -> (i32, i32) {
    %c0_i32 = arith.constant 0 : i32
    %c0_i32_0 = arith.constant 0 : i32
    %c0_i32_1 = arith.constant 0 : i32
    return %c0_i32, %c0_i32_0 : i32, i32
  }
  func.func @transform_2(%arg0: i32) -> (i32, i32) {
    %c0_i32 = arith.constant 0 : i32
    %c0_i32_0 = arith.constant 0 : i32
    %c0_i32_1 = arith.constant 0 : i32
    return %c0_i32, %c0_i32_0 : i32, i32
  }
  func.func @transform_3(%arg0: i32) -> (i32, i32) {
    %c0_i32 = arith.constant 0 : i32
    %c0_i32_0 = arith.constant 0 : i32
    return %arg0, %c0_i32 : i32, i32
  }
}

</mosaic_0001>

<bundles_post_ra>
// kernel: patch_embed_forward.2
= control target key start
LH: loop header
LB: loop body
LE: loop exit
PB: predicated region body
PF: predicated region fallthrough
CT: control target
= control target key end

     0   :  { %vm94_vm0 = vcmask 261120   ;;  %vm296_vm1 = vcmask 519168   ;;  %s537_s1 = inlined_call_operand.vmem [shape: bf16[32,64], index: 1, kind: input, shape index: {}]   ;;  %s538_s0 = inlined_call_operand.vmem [shape: bf16[128,32], index: 0, kind: input, shape index: {}]   ;;  %s539_s2 = inlined_call_operand.vmem [shape: f32[1,64], index: 2, kind: input, shape index: {}]   ;;  %s540_s3 = inlined_call_operand.vmem [shape: bf16[128,64], index: 3, kind: output, shape index: {}]  }
   0x1   :  { %v402_v0 = vld [vmem:[%s537_s1] sm:$0xff]   ;;  %v403_v1 = vld [vmem:[%s537_s1 + $0x8] sm:$0xff]   ;;  %v408_v6 = vld [vmem:[%s538_s0 + $0x10] sm:$0xff]  }
   0x2   :  { %378 = vmatprep.subr.bf16.mxu0 %v402_v0  ;;  %398 = vmatprep.subr.bf16.mxu1 %v402_v0  ;;  %v404_v2 = vld [vmem:[%s538_s0] sm:$0xff]   ;;  %v406_v4 = vld [vmem:[%s538_s0 + $0x8] sm:$0xff]   ;;  %v409_v7 = vld [vmem:[%s538_s0 + $0x30] sm:$0xff]  }
   0x3   :  { %379 = vmatpush3.bf16.msra.mxu0 %v402_v0  ;;  %400 = vmatpush3.bf16.msra.mxu1 %v402_v0  ;;  %v405_v3 = vld [vmem:[%s538_s0 + $0x20] sm:$0xff]   ;;  %v407_v5 = vld [vmem:[%s538_s0 + $0x28] sm:$0xff]   ;;  %v410_v8 = vld [vmem:[%s538_s0 + $0x18] sm:$0xff]  }
   0x4   :  { %380 = vmatprep.subr.bf16.mxu0 %v403_v1  ;;  %399 = vmatprep.subr.bf16.mxu1 %v403_v1  ;;  %v411_v9 = vld [vmem:[%s538_s0 + $0x38] sm:$0xff]   ;;  %v317_v10 = vld [vmem:[%s539_s2] ss:$0 sm:$0xff] }
   0x5   :  { %382 = vmatprep.mubr.msk.bf16.mxu0 %vm94_vm0, %v404_v2  ;;  %390 = vmatprep.mubr.msk.bf16.mxu1 %vm94_vm0, %v405_v3 }
   0x7   :  { %381 = vmatpush3.bf16.msra.mxu0 %v403_v1  ;;  %401 = vmatpush3.bf16.msra.mxu1 %v403_v1 }
   0xa   :  { %383 = vmatmul.mubr.msk.bf16.vlgmr.msra.gmra.mrb[0].mxu0 %vm94_vm0, %v406_v4  ;;  %391 = vmatmul.mubr.msk.bf16.vlgmr.msra.gmra.mrb[0].mxu1 %vm94_vm0, %v407_v5 }
   0xb   :  { %386 = vmatprep.mubr.msk.bf16.mxu0 %vm94_vm0, %v408_v6  ;;  %394 = vmatprep.mubr.msk.bf16.mxu1 %vm94_vm0, %v409_v7 }
  0x12   :  { %387 = vmatmul.mubr.msk.bf16.gmra.mrb[4].mxu0 %vm94_vm0, %v410_v8  ;;  %395 = vmatmul.mubr.msk.bf16.gmra.mrb[4].mxu1 %vm94_vm0, %v411_v9 }
  0xdd   :  { %v384_v11 = vpop.f32.mrb[0].mxu0  ;;  %v392_v12 = vpop.f32.mrb[0].mxu1 }
  0xde   :  { %v162_v13 = vadd.f32 %v384_v11, %v317_v10  ;;  %v194_v14 = vadd.f32 %v392_v12, %v317_v10  ;;  %v153_v15 = vpop.f32.mrb[1].mxu0  ;;  %v185_v16 = vpop.f32.mrb[1].mxu1 }
  0xdf   :  { %v154_v17 = vadd.f32 %v317_v10, %v153_v15  ;;  %v186_v18 = vadd.f32 %v317_v10, %v185_v16  ;;  %v385_v19 = vpop.f32.mrb[2].mxu0  ;;  %v393_v20 = vpop.f32.mrb[2].mxu1 }
  0xe0   :  { %v218_v21 = vmax.f32 %v162_v13, 0.0  ;;  %v226_v22 = vmax.f32 %v194_v14, 0.0  ;;  %v165_v23 = vadd.f32 %v385_v19, %v317_v10  ;;  %v197_v24 = vadd.f32 %v393_v20, %v317_v10  ;;  %v156_v25 = vpop.f32.mrb[3].mxu0  ;;  %v188_v26 = vpop.f32.mrb[3].mxu1 }
  0xe1   :  { %v216_v27 = vmax.f32 %v154_v17, 0.0  ;;  %v224_v28 = vmax.f32 %v186_v18, 0.0  ;;  %v157_v29 = vadd.f32 %v317_v10, %v156_v25  ;;  %v189_v30 = vadd.f32 %v317_v10, %v188_v26 }
  0xe2   :  { %v354_v31 = vpack.c.bf16 %v218_v21, %v218_v21  ;;  %v362_v32 = vpack.c.bf16 %v226_v22, %v226_v22  ;;  %v219_v33 = vmax.f32 %v165_v23, 0.0  ;;  %v227_v34 = vmax.f32 %v197_v24, 0.0 }
  0xe3   :  { %v352_v35 = vpack.c.bf16 %v216_v27, %v216_v27  ;;  %v360_v36 = vpack.c.bf16 %v224_v28, %v224_v28  ;;  %v217_v37 = vmax.f32 %v157_v29, 0.0  ;;  %v225_v38 = vmax.f32 %v189_v30, 0.0 }
  0xe4   :  { %299 = vst.msk [vmem:[%s540_s3 + $0x8] sm:$0xf] %vm296_vm1, %v354_v31  ;;  %307 = vst.msk [vmem:[%s540_s3 + $0x28] sm:$0xf] %vm296_vm1, %v362_v32  ;;  %v355_v39 = vpack.c.bf16 %v219_v33, %v219_v33  ;;  %v363_v40 = vpack.c.bf16 %v227_v34, %v227_v34 }
  0xe5   :  { %297 = vst.msk [vmem:[%s540_s3] sm:$0xf] %vm296_vm1, %v352_v35  ;;  %305 = vst.msk [vmem:[%s540_s3 + $0x20] sm:$0xf] %vm296_vm1, %v360_v36  ;;  %v353_v41 = vpack.c.bf16 %v217_v37, %v217_v37  ;;  %v361_v42 = vpack.c.bf16 %v225_v38, %v225_v38  ;;  %v388_v43 = vpop.f32.mrb[4].mxu0  ;;  %v396_v44 = vpop.f32.mrb[4].mxu1 }
  0xe6   :  { %300 = vst.msk [vmem:[%s540_s3 + $0xc] sm:$0xf] %vm296_vm1, %v355_v39  ;;  %308 = vst.msk [vmem:[%s540_s3 + $0x2c] sm:$0xf] %vm296_vm1, %v363_v40  ;;  %v178_v45 = vadd.f32 %v388_v43, %v317_v10  ;;  %v210_v46 = vadd.f32 %v396_v44, %v317_v10  ;;  %v169_v47 = vpop.f32.mrb[5].mxu0  ;;  %v201_v48 = vpop.f32.mrb[5].mxu1 }
  0xe7   :  { %298 = vst.msk [vmem:[%s540_s3 + $0x4] sm:$0xf] %vm296_vm1, %v353_v41  ;;  %306 = vst.msk [vmem:[%s540_s3 + $0x24] sm:$0xf] %vm296_vm1, %v361_v42  ;;  %v170_v49 = vadd.f32 %v317_v10, %v169_v47  ;;  %v202_v50 = vadd.f32 %v317_v10, %v201_v48  ;;  %v389_v51 = vpop.f32.mrb[6].mxu0  ;;  %v397_v52 = vpop.f32.mrb[6].mxu1 }
  0xe8   :  { %v222_v53 = vmax.f32 %v178_v45, 0.0  ;;  %v230_v54 = vmax.f32 %v210_v46, 0.0  ;;  %v181_v55 = vadd.f32 %v389_v51, %v317_v10  ;;  %v213_v56 = vadd.f32 %v397_v52, %v317_v10  ;;  %v172_v57 = vpop.f32.mrb[7].mxu0  ;;  %v204_v58 = vpop.f32.mrb[7].mxu1 }
  0xe9   :  { %v220_v59 = vmax.f32 %v170_v49, 0.0  ;;  %v228_v60 = vmax.f32 %v202_v50, 0.0  ;;  %v173_v61 = vadd.f32 %v317_v10, %v172_v57  ;;  %v205_v62 = vadd.f32 %v317_v10, %v204_v58 }
  0xea   :  { %v358_v63 = vpack.c.bf16 %v222_v53, %v222_v53  ;;  %v366_v0 = vpack.c.bf16 %v230_v54, %v230_v54  ;;  %v223_v1 = vmax.f32 %v181_v55, 0.0  ;;  %v231_v2 = vmax.f32 %v213_v56, 0.0 }
  0xeb   :  { %v356_v3 = vpack.c.bf16 %v220_v59, %v220_v59  ;;  %v364_v4 = vpack.c.bf16 %v228_v60, %v228_v60  ;;  %v221_v5 = vmax.f32 %v173_v61, 0.0  ;;  %v229_v6 = vmax.f32 %v205_v62, 0.0 }
  0xec   :  { %303 = vst.msk [vmem:[%s540_s3 + $0x18] sm:$0xf] %vm296_vm1, %v358_v63  ;;  %311 = vst.msk [vmem:[%s540_s3 + $0x38] sm:$0xf] %vm296_vm1, %v366_v0  ;;  %v359_v7 = vpack.c.bf16 %v223_v1, %v223_v1  ;;  %v367_v8 = vpack.c.bf16 %v231_v2, %v231_v2 }
  0xed   :  { %301 = vst.msk [vmem:[%s540_s3 + $0x10] sm:$0xf] %vm296_vm1, %v356_v3  ;;  %309 = vst.msk [vmem:[%s540_s3 + $0x30] sm:$0xf] %vm296_vm1, %v364_v4  ;;  %v357_v9 = vpack.c.bf16 %v221_v5, %v221_v5  ;;  %v365_v10 = vpack.c.bf16 %v229_v6, %v229_v6 }
  0xee   :  { %304 = vst.msk [vmem:[%s540_s3 + $0x1c] sm:$0xf] %vm296_vm1, %v359_v7  ;;  %312 = vst.msk [vmem:[%s540_s3 + $0x3c] sm:$0xf] %vm296_vm1, %v367_v8 }
  0xef   :  { %302 = vst.msk [vmem:[%s540_s3 + $0x14] sm:$0xf] %vm296_vm1, %v357_v9  ;;  %310 = vst.msk [vmem:[%s540_s3 + $0x34] sm:$0xf] %vm296_vm1, %v365_v10 }

// kernel: patch_embed_forward.3
= control target key start
LH: loop header
LB: loop body
LE: loop exit
PB: predicated region body
PF: predicated region fallthrough
CT: control target
= control target key end

     0   :  { %vm373_vm0 = vcmask 523264   ;;  %s932_s0 = inlined_call_operand.vmem [shape: bf16[32,576], index: 0, kind: input, shape index: {}]   ;;  %s933_s1 = inlined_call_operand.vmem [shape: bf16[576,96], index: 1, kind: input, shape index: {}]   ;;  %s934_s2 = inlined_call_operand.vmem [shape: f32[1,96], index: 2, kind: input, shape index: {}]   ;;  %s935_s3 = inlined_call_operand.hbm [shape: f32[32,96], index: 3, kind: output, shape index: {}]  }
   0x1   :  { %v678_v0 = vld [vmem:[%s933_s1 + $0x40] sm:$0xff]   ;;  %v682_v4 = vld [vmem:[%s933_s1 + $0x48] sm:$0xff]   ;;  %v686_v8 = vld [vmem:[%s933_s1 + $0x50] sm:$0xff]  }
   0x2   :  { %v679_v1 = vld [vmem:[%s933_s1] sm:$0xff]   ;;  %601 = vmatprep.subr.bf16.mxu0 %v678_v0  ;;  %v683_v5 = vld [vmem:[%s933_s1 + $0x8] sm:$0xff]   ;;  %v687_v9 = vld [vmem:[%s933_s1 + $0x10] sm:$0xff]  }
   0x3   :  { %v680_v2 = vld [vmem:[%s933_s1 + $0xc0] sm:$0xff]   ;;  %602 = vmatpush3.bf16.msra.mxu0 %v679_v1  ;;  %v684_v6 = vld [vmem:[%s933_s1 + $0xc8] sm:$0xff]   ;;  %v688_v10 = vld [vmem:[%s933_s1 + $0xd0] sm:$0xff]  }
   0x4   :  { %v681_v3 = vld [vmem:[%s933_s1 + $0x80] sm:$0xff]   ;;  %629 = vmatprep.subr.bf16.mxu1 %v680_v2  ;;  %603 = vmatprep.subr.bf16.mxu0 %v682_v4  ;;  %v685_v7 = vld [vmem:[%s933_s1 + $0x88] sm:$0xff]   ;;  %v689_v11 = vld [vmem:[%s933_s1 + $0x90] sm:$0xff]  }
   0x5   :  { %630 = vmatpush3.bf16.msra.mxu1 %v681_v3  ;;  %v690_v12 = vld [vmem:[%s933_s1 + $0x58] sm:$0xff]   ;;  %v694_v16 = vld [vmem:[%s933_s1 + $0x60] sm:$0xff]   ;;  %v698_v20 = vld [vmem:[%s933_s1 + $0x68] sm:$0xff]  }
   0x6   :  { %631 = vmatprep.subr.bf16.mxu1 %v684_v6  ;;  %v691_v13 = vld [vmem:[%s933_s1 + $0x18] sm:$0xff]   ;;  %v695_v17 = vld [vmem:[%s933_s1 + $0x20] sm:$0xff]   ;;  %v699_v21 = vld [vmem:[%s933_s1 + $0x28] sm:$0xff]  }
   0x7   :  { %604 = vmatpush3.bf16.msra.mxu0 %v683_v5  ;;  %v692_v14 = vld [vmem:[%s933_s1 + $0xd8] sm:$0xff]   ;;  %v696_v18 = vld [vmem:[%s933_s1 + $0xe0] sm:$0xff]   ;;  %v700_v22 = vld [vmem:[%s933_s1 + $0xe8] sm:$0xff]  }
   0x8   :  { %605 = vmatprep.subr.bf16.mxu0 %v686_v8  ;;  %v693_v15 = vld [vmem:[%s933_s1 + $0x98] sm:$0xff]   ;;  %v697_v19 = vld [vmem:[%s933_s1 + $0xa0] sm:$0xff]   ;;  %v701_v23 = vld [vmem:[%s933_s1 + $0xa8] sm:$0xff]  }
   0x9   :  { %632 = vmatpush3.bf16.msra.mxu1 %v685_v7  ;;  %v702_v24 = vld [vmem:[%s933_s1 + $0x70] sm:$0xff]   ;;  %v706_v28 = vld [vmem:[%s933_s1 + $0x78] sm:$0xff]   ;;  %v713_v34 = vld [vmem:[%s933_s1 + $0x100] sm:$0xff]  }
   0xa   :  { %633 = vmatprep.subr.bf16.mxu1 %v688_v10  ;;  %v703_v25 = vld [vmem:[%s933_s1 + $0x30] sm:$0xff]   ;;  %v707_v29 = vld [vmem:[%s933_s1 + $0x38] sm:$0xff]   ;;  %v716_v36 = vld [vmem:[%s932_s0 + $0xc] ss:$20 sps:$4 sm:$0xff]  }
   0xb   :  { %606 = vmatpush3.bf16.msra.mxu0 %v687_v9  ;;  %v704_v26 = vld [vmem:[%s933_s1 + $0xf0] sm:$0xff]   ;;  %v708_v30 = vld [vmem:[%s933_s1 + $0xf8] sm:$0xff]   ;;  %v717_v37 = vld [vmem:[%s933_s1 + $0x108] sm:$0xff]   ;;  %461 = vmatprep.mubr.bf16.mxu1 %v716_v36 }
   0xc   :  { %607 = vmatprep.subr.bf16.mxu0 %v690_v12  ;;  %v705_v27 = vld [vmem:[%s933_s1 + $0xb0] sm:$0xff]   ;;  %v711_v32 = vld [vmem:[%s932_s0 + $0x4] ss:$20 sps:$4 sm:$0xff]   ;;  %v714_v35 = vld [vmem:[%s932_s0 + $0x8] ss:$20 sps:$4 sm:$0xff]  }
   0xd   :  { %634 = vmatpush3.bf16.msra.mxu1 %v689_v11  ;;  %v709_v31 = vld [vmem:[%s932_s0] ss:$20 sps:$4 sm:$0xff]   ;;  %v712_v33 = vld [vmem:[%s933_s1 + $0xb8] sm:$0xff]   ;;  %412 = vmatprep.mubr.bf16.mxu0 %v711_v32  ;;  %v724_v42 = vld [vmem:[%s932_s0 + $0x30] ss:$20 sps:$4 sm:$0xff]  }
   0xe   :  { %635 = vmatprep.subr.bf16.mxu1 %v692_v14  ;;  %v718_v38 = vld [vmem:[%s932_s0 + $0x2c] ss:$20 sps:$4 sm:$0xff]   ;;  %v720_v39 = vld [vmem:[%s932_s0 + $0x28] ss:$20 sps:$4 sm:$0xff]   ;;  %v721_v40 = vld [vmem:[%s933_s1 + $0x110] sm:$0xff]  }
   0xf   :  { %608 = vmatpush3.bf16.msra.mxu0 %v691_v13  ;;  %v722_v41 = vld [vmem:[%s932_s0 + $0x34] ss:$20 sps:$4 sm:$0xff]   ;;  %v725_v43 = vld [vmem:[%s933_s1 + $0x118] sm:$0xff]   ;;  %v726_v44 = vld [vmem:[%s932_s0 + $0x10] ss:$20 sps:$4 sm:$0xff]  }
  0x10   :  { %609 = vmatprep.subr.bf16.mxu0 %v694_v16 }
  0x11   :  { %636 = vmatpush3.bf16.msra.mxu1 %v693_v15 }
  0x12   :  { %637 = vmatprep.subr.bf16.mxu1 %v696_v18 }
  0x13   :  { %610 = vmatpush3.bf16.msra.mxu0 %v695_v17 }
  0x14   :  { %611 = vmatprep.subr.bf16.mxu0 %v698_v20 }
  0x15   :  { %638 = vmatpush3.bf16.msra.mxu1 %v697_v19 }
  0x16   :  { %639 = vmatprep.subr.bf16.mxu1 %v700_v22 }
  0x17   :  { %612 = vmatpush3.bf16.msra.mxu0 %v699_v21 }
  0x18   :  { %613 = vmatprep.subr.bf16.mxu0 %v702_v24 }
  0x19   :  { %640 = vmatpush3.bf16.msra.mxu1 %v701_v23 }
  0x1a   :  { %641 = vmatprep.subr.bf16.mxu1 %v704_v26 }
  0x1b   :  { %614 = vmatpush3.bf16.msra.mxu0 %v703_v25 }
  0x1c   :  { %615 = vmatprep.subr.bf16.mxu0 %v706_v28 }
  0x1d   :  { %642 = vmatpush3.bf16.msra.mxu1 %v705_v27 }
  0x1e   :  { %643 = vmatprep.subr.bf16.mxu1 %v708_v30 }
  0x1f   :  { %616 = vmatpush3.bf16.msra.mxu0 %v707_v29 }
  0x20   :  { %663 = vmatprep.subr.bf16.mxu0 %v713_v34 }
  0x21   :  { %644 = vmatpush3.bf16.msra.mxu1 %v712_v33 }
  0x22   :  { %413 = vmatmul.mubr.bf16.vlgmr.msra.gmra.mrb[0].mxu0 %v709_v31 }
  0x23   :  { %664 = vmatpush3.bf16.msra.mxu0 %v713_v34  ;;  %420 = vmatprep.mubr.bf16.mxu0 %v718_v38 }
  0x24   :  { %462 = vmatmul.mubr.bf16.vlgmr.msra.gmra.mrb[0].mxu1 %v714_v35  ;;  %665 = vmatprep.subr.bf16.mxu0 %v717_v37 }
  0x25   :  { %469 = vmatprep.mubr.bf16.mxu1 %v722_v41 }
  0x27   :  { %666 = vmatpush3.bf16.msra.mxu0 %v717_v37 }
  0x28   :  { %667 = vmatprep.subr.bf16.mxu0 %v721_v40 }
  0x2a   :  { %421 = vmatmul.mubr.bf16.gmra.mrb[4].mxu0 %v720_v39 }
  0x2b   :  { %8 = vsyncpa [#allocation3], 0  ;;  %671 = vmatprep.mubr.msk.bf16.mxu0 %vm373_vm0, %v726_v44  ;;  %668 = vmatpush3.bf16.msra.mxu0 %v721_v40  ;;  %v727_v45 = vld [vmem:[%s932_s0 + $0x38] ss:$20 sps:$4 sm:$0xff]   ;;  %v552_v47 = vld [vmem:[%s934_s2] ss:$0 sm:$0xff] }
  0x2c   :  { %470 = vmatmul.mubr.bf16.gmra.mrb[4].mxu1 %v724_v42  ;;  %669 = vmatprep.subr.bf16.mxu0 %v725_v43  ;;  %vm531_vm1 = vcmask 785408   ;;  %s752_s0 = smov [#allocation2]  }
  0x2d   :  { %s541_s2 = sshll.u32 %s752_s0, 4  ;;  %s542_s2 = int_to_ptr.vmem [resolvable:$true] %s541_s2 }
  0x2e   :  { %s728_s24 = scalar_lea.vmem %s542_s2, 512  ;;  %p733_p1 = scmp.lt.s32.totalorder %s542_s2, %s542_s2 }
  0x2f   :  { %670 = vmatpush3.bf16.msra.mxu0 %v725_v43  ;;  %p729_p0 = scmp.ne.s32.totalorder %s542_s2, %s728_s24  ;;  %p734_p2 = scmp.lt.s32.totalorder %s728_s24, %s728_s24 }
  0x31   :  { %p735_p3 = por %p734_p2, %p733_p1 }
  0x32   :  { %672 = vmatmul.mubr.msk.bf16.vlgmr.msra.gmra.mrb[8].mxu0 %vm373_vm0, %v727_v45 }
  0x33   :  { %p736_p4 = pnand %p735_p3, %p729_p0 }
  0xf5   :  { %v617_v46 = vpop.f32.mrb[0].mxu0 }
  0xf6   :  { %v618_v48 = vpop.f32.mrb[1].mxu0 }
  0xf7   :  { %v619_v49 = vadd.f32 %v618_v48, %v617_v46  ;;  %v620_v50 = vpop.f32.mrb[2].mxu0  ;;  %v645_v51 = vpop.f32.mrb[0].mxu1 }
  0xf8   :  { %v621_v52 = vpop.f32.mrb[3].mxu0  ;;  %v646_v55 = vpop.f32.mrb[1].mxu1 }
  0xf9   :  { %v415_v53 = vadd.f32 %v619_v49, %v552_v47  ;;  %v622_v54 = vadd.f32 %v621_v52, %v620_v50  ;;  %v647_v56 = vadd.f32 %v646_v55, %v645_v51  ;;  %v648_v57 = vpop.f32.mrb[2].mxu1 }
  0xfa   :  { %v649_v59 = vpop.f32.mrb[3].mxu1 }
  0xfb   :  { %v418_v58 = vadd.f32 %v622_v54, %v552_v47  ;;  %v650_v60 = vadd.f32 %v649_v59, %v648_v57  ;;  %v464_v61 = vadd.f32 %v647_v56, %v415_v53 }
  0xfd   :  { %v623_v62 = vpop.f32.mrb[4].mxu0  ;;  %v467_v0 = vadd.f32 %v650_v60, %v418_v58 }
  0xfe   :  { %v624_v63 = vpop.f32.mrb[5].mxu0 }
  0xff   :  { %v625_v1 = vadd.f32 %v624_v63, %v623_v62  ;;  %v626_v2 = vpop.f32.mrb[6].mxu0  ;;  %v651_v3 = vpop.f32.mrb[4].mxu1 }
 0x100   :  { %v627_v4 = vpop.f32.mrb[7].mxu0  ;;  %v652_v7 = vpop.f32.mrb[5].mxu1 }
 0x101   :  { %v423_v5 = vadd.f32 %v625_v1, %v552_v47  ;;  %v628_v6 = vadd.f32 %v627_v4, %v626_v2  ;;  %v653_v8 = vadd.f32 %v652_v7, %v651_v3  ;;  %v654_v9 = vpop.f32.mrb[6].mxu1 }
 0x102   :  { %v655_v11 = vpop.f32.mrb[7].mxu1 }
 0x103   :  { %v426_v10 = vadd.f32 %v628_v6, %v552_v47  ;;  %v656_v12 = vadd.f32 %v655_v11, %v654_v9  ;;  %v472_v13 = vadd.f32 %v653_v8, %v423_v5 }
 0x105   :  { %v673_v14 = vpop.f32.mrb[8].mxu0  ;;  %v475_v15 = vadd.f32 %v656_v12, %v426_v10 }
 0x106   :  { %v521_v16 = vadd.f32 %v673_v14, %v472_v13  ;;  %v512_v17 = vpop.f32.mrb[9].mxu0 }
 0x107   :  { %v513_v18 = vadd.f32 %v512_v17, %v464_v61  ;;  %v674_v19 = vpop.f32.mrb[10].mxu0 }
 0x108   :  { %v529_v20 = vmax.f32 %v521_v16, 0.0  ;;  %v524_v21 = vadd.f32 %v674_v19, %v475_v15  ;;  %v515_v22 = vpop.f32.mrb[11].mxu0 }
 0x109   :  { %v527_v23 = vmax.f32 %v513_v18, 0.0  ;;  %v516_v24 = vadd.f32 %v515_v22, %v467_v0 }
 0x10a   :  { %534 = vst.msk [vmem:[#allocation2 + $0x10] sm:$0xff] %vm531_vm1, %v529_v20  ;;  %v530_v25 = vmax.f32 %v524_v21, 0.0 }
 0x10b   :  { %532 = vst.msk [vmem:[#allocation2] sm:$0xff] %vm531_vm1, %v527_v23  ;;  %v528_v26 = vmax.f32 %v516_v24, 0.0 }
 0x10c   :  { %535 = vst.msk [vmem:[#allocation2 + $0x18] sm:$0xff] %vm531_vm1, %v530_v25 }
 0x10d   :  { %533 = vst.msk [vmem:[#allocation2 + $0x8] sm:$0xff] %vm531_vm1, %v528_v26 }
 0x10e   :  { %739 = shalt.err (!%p736_p4)
}
 0x10f   :  { %s740_s27 = scalar_lea.hbm %s935_s3, 512 }
 0x110   :  { %p741_p5 = scmp.ne.s32.totalorder %s935_s3, %s740_s27  ;;  %p744_p6 = scmp.lt.u32.totalorder %s740_s27, %s935_s3 }
 0x112   :  { %p746_p7 = pnand %p744_p6, %p741_p5 }
 0x114   :  { %749 = shalt.err (!%p746_p7)
}
 0x115   :  { %s753_s5 = smov 128   ;;  %s754_s6 = smov 8  }
 0x116   :  { %547 = dma.vmem_to_hbm [thread:$0]  %s542_s2, 512, %s935_s3, [#allocation3], %s753_s5, %s753_s5, %s754_s6  }
 0x117   :  { %750 = dma.done.wait [#allocation3], 512  }
 0x118   :  { %751 = vsyncadd [#allocation3], 4294966784 }
 0x119   :  { %551 = vsyncpa [#allocation3], 1 }

</bundles_post_ra>
